<compile_context>
chip_gen: v6e
topology: v6e:2x2x1
jax: 0.10.0
libtpu: 0.0.40
codegen_flags: <defaults>
</compile_context>

<pallas_src>
import functools
from typing import Any, NamedTuple

import numpy as np
import jax
import jax.numpy as jnp
from jax.experimental import pallas as pl
from jax.experimental.pallas import tpu as pltpu


def _round_up(x, m):
    return ((x + m - 1) // m) * m


def _cdiv(a, b):
    return (a + b - 1) // b


# ----------------------------------------------------------------------------
# Kernels
# ----------------------------------------------------------------------------
def _highway_kernel_full(x_ref, w_ref, b_ref, o_ref, *, dpad):
    """Whole fused [H | T] weight resident in VMEM; 1-D row grid."""
    x = x_ref[...]                                                   # (tm, Dpad)
    g = jnp.dot(x, w_ref[...], preferred_element_type=jnp.float32) + b_ref[...]
    h = jnp.maximum(g[:, :dpad], 0.0)          # lane-aligned static slice
    t = jax.nn.sigmoid(g[:, dpad:])            # EUP path
    xf = x.astype(jnp.float32)
    o_ref[...] = (xf + t * (h - xf)).astype(o_ref.dtype)


def _highway_kernel_coltiled(x_ref, xc_ref, w_ref, b_ref, o_ref, *, tn):
    """Output columns tiled; 2-D (row, col) grid; weight slab (Dpad, 2*tn)."""
    g = jnp.dot(x_ref[...], w_ref[...],
                preferred_element_type=jnp.float32) + b_ref[...]    # (tm, 2*tn)
    h = jnp.maximum(g[:, :tn], 0.0)
    t = jax.nn.sigmoid(g[:, tn:])
    xc = xc_ref[...].astype(jnp.float32)                            # (tm, tn)
    o_ref[...] = (xc + t * (h - xc)).astype(o_ref.dtype)


# ----------------------------------------------------------------------------
# One-time parameter packing (hoisted out of the forward path)
# ----------------------------------------------------------------------------
class HighwayParams(NamedTuple):
    w: jax.Array          # (Dpad, 2*Dpad) in compute_dtype, per-tile [H_j | T_j]
    b: jax.Array          # (1, 2*Dpad) float32, same per-tile layout
    d: int
    dpad: int
    tn: int
    n_col: int
    compute_dtype: Any


def _default_weight_budget():
    """Generation-aware weight-VMEM budget (~1/4 of physical VMEM)."""
    try:
        cap = pltpu.get_tpu_info().vmem_capacity_bytes
    except Exception:
        cap = 64 << 20
    return max(cap // 4, 8 << 20)


def highway_pack_params(w_h, b_h, w_t, b_t, *, compute_dtype=jnp.float32,
                        weight_vmem_budget=None):
    D = w_h.shape[0]
    assert w_h.shape == (D, D) and w_t.shape == (D, D), \
        "Highway residual requires in_size == out_size"
    if weight_vmem_budget is None:
        weight_vmem_budget = _default_weight_budget()

    Dpad = max(_round_up(D, 128), 128)
    itemsize = jnp.dtype(compute_dtype).itemsize

    # Column tile: full weight resident (single buffer) if it fits the budget,
    # otherwise the largest 128-multiple divisor of Dpad whose double-buffered
    # slab still fits (128 as a floor).
    if Dpad * 2 * Dpad * itemsize <= weight_vmem_budget:
        tn = Dpad
    else:
        tn = 128
        for cand in range(256, Dpad, 128):
            if Dpad % cand == 0 and 2 * Dpad * 2 * cand * itemsize <= weight_vmem_budget:
                tn = cand
    n_col = Dpad // tn

    # Fused weight, per-column-tile layout: lanes [2*j*tn, 2*j*tn+tn) = W_H.T
    # tile j, the following tn lanes = W_T.T tile j. Padded rows/cols are zero.
    wh = jnp.zeros((Dpad, Dpad), jnp.float32).at[:D, :D].set(
        jnp.asarray(w_h, jnp.float32).T)
    wt = jnp.zeros((Dpad, Dpad), jnp.float32).at[:D, :D].set(
        jnp.asarray(w_t, jnp.float32).T)
    w = jnp.stack([wh.reshape(Dpad, n_col, tn),
                   wt.reshape(Dpad, n_col, tn)], axis=2).reshape(Dpad, 2 * Dpad)
    w = w.astype(compute_dtype)

    bh = jnp.zeros((Dpad,), jnp.float32).at[:D].set(jnp.asarray(b_h, jnp.float32))
    bt = jnp.zeros((Dpad,), jnp.float32).at[:D].set(jnp.asarray(b_t, jnp.float32))
    b = jnp.stack([bh.reshape(n_col, tn),
                   bt.reshape(n_col, tn)], axis=1).reshape(1, 2 * Dpad)

    return HighwayParams(w=w, b=b, d=D, dpad=Dpad, tn=tn, n_col=n_col,
                         compute_dtype=jnp.dtype(compute_dtype))


# ----------------------------------------------------------------------------
# Forward: per-call work is only the x pad + pallas_call
# ----------------------------------------------------------------------------
def highway_forward(x, params: HighwayParams, *, block_m=512):
    M, D = x.shape
    assert D == params.d, "input feature size mismatch with packed params"
    Dpad, tn, n_col = params.dpad, params.tn, params.n_col
    cdt = params.compute_dtype

    Mpad = _round_up(M, 8)
    # Row tile: at most block_m, and at least two row tiles whenever possible
    # so the "parallel" axis can shard across both TensorCores on v7x.
    tm = Mpad if Mpad < 16 else min(block_m, _round_up(_cdiv(Mpad, 2), 8))
    grid_m = _cdiv(Mpad, tm)

    if (M, D) == (Mpad, Dpad) and x.dtype == cdt:
        xp = x
    else:
        xp = jnp.zeros((Mpad, Dpad), cdt).at[:M, :D].set(x.astype(cdt))

    # Explicit VMEM limit sized from the actual tiles (2x margin, >= 32 MiB).
    itm = jnp.dtype(cdt).itemsize
    est = (2 * tm * Dpad * itm                                  # x tiles
           + (1 if n_col == 1 else 2) * Dpad * 2 * tn * itm     # fused weight
           + 2 * 8 * 2 * tn * 4                                 # bias (padded)
           + 2 * tm * tn * 4                                    # output tiles
           + (2 * tm * tn * itm if n_col > 1 else 0))           # x column tiles
    vmem_limit = int(min(max(2 * est + (4 << 20), 32 << 20), 60 << 20))

    out_shape = jax.ShapeDtypeStruct((Mpad, Dpad), jnp.float32)

    if n_col == 1:
        # Whole fused weight resident; try single-buffering the constants.
        def build(single_buffer_consts):
            const_kwargs = ({"pipeline_mode": pl.Buffered(1)}
                            if single_buffer_consts else {})
            return pl.pallas_call(
                functools.partial(_highway_kernel_full, dpad=Dpad),
                out_shape=out_shape,
                grid=(grid_m,),
                in_specs=[
                    pl.BlockSpec((tm, Dpad), lambda i: (i, 0)),
                    pl.BlockSpec((Dpad, 2 * Dpad), lambda i: (0, 0),
                                 **const_kwargs),
                    pl.BlockSpec((1, 2 * Dpad), lambda i: (0, 0),
                                 **const_kwargs),
                ],
                out_specs=pl.BlockSpec((tm, Dpad), lambda i: (i, 0)),
                compiler_params=pltpu.CompilerParams(
                    dimension_semantics=("parallel",),
                    vmem_limit_bytes=vmem_limit),
            )(xp, params.w, params.b)

        try:
            out = build(True)
        except Exception:
            out = build(False)   # fallback: default double buffering
    else:
        # Column-tiled weight: each step streams a (Dpad, 2*tn) [H_j | T_j] slab.
        out = pl.pallas_call(
            functools.partial(_highway_kernel_coltiled, tn=tn),
            out_shape=out_shape,
            grid=(grid_m, n_col),
            in_specs=[
                pl.BlockSpec((tm, Dpad), lambda i, j: (i, 0)),     # x (matmul)
                pl.BlockSpec((tm, tn), lambda i, j: (i, j)),       # x (residual)
                pl.BlockSpec((Dpad, 2 * tn), lambda i, j: (0, j)),  # weight slab
                pl.BlockSpec((1, 2 * tn), lambda i, j: (0, j)),    # bias slab
            ],
            out_specs=pl.BlockSpec((tm, tn), lambda i, j: (i, j)),
            compiler_params=pltpu.CompilerParams(
                dimension_semantics=("parallel", "parallel"),
                vmem_limit_bytes=vmem_limit),
        )(xp, xp, params.w, params.b)

    return out[:M, :D]


# ----------------------------------------------------------------------------
# Pure-JAX reference (mirrors the PyTorch forward exactly)
# ----------------------------------------------------------------------------
def reference_forward(x, w_h, b_h, w_t, b_t):
    h = jnp.maximum(x @ w_h.T + b_h, 0.0)
    t = jax.nn.sigmoid(x @ w_t.T + b_t)
    return h * t + x * (1.0 - t)


# ----------------------------------------------------------------------------
# Parameter init matching Highway.__init__ (bias_H = 0, bias_T = -1)
# ----------------------------------------------------------------------------
def init_params(key, size):
    k1, k2 = jax.random.split(key, 2)
    bound = 1.0 / np.sqrt(size)
    w_h = jax.random.uniform(k1, (size, size), jnp.float32, -bound, bound)
    w_t = jax.random.uniform(k2, (size, size), jnp.float32, -bound, bound)
    b_h = jnp.zeros((size,), jnp.float32)
    b_t = jnp.full((size,), -1.0, jnp.float32)
    return w_h, b_h, w_t, b_t


# ----------------------------------------------------------------------------
if __name__ == "__main__":
    key = jax.random.PRNGKey(0)
    k1, k2, k3, k4, k5, k6 = jax.random.split(key, 6)

    # 1) small case consistent with the module (batch=2, hidden=32), f32 exact
    D1, B1 = 32, 2
    p1 = init_params(k1, D1)
    x1 = jax.random.normal(k2, (B1, D1), jnp.float32)
    packed1 = highway_pack_params(*p1)
    y1 = jax.block_until_ready(highway_forward(x1, packed1))
    np.testing.assert_allclose(np.asarray(y1),
                               np.asarray(reference_forward(x1, *p1)),
                               rtol=1e-5, atol=1e-5, err_msg="small f32 case")

    # 2) ragged batch -> two-row-tile "parallel" grid, no block_m padding waste
    D2, B2 = 96, 300
    p2 = init_params(k3, D2)
    x2 = jax.random.normal(k4, (B2, D2), jnp.float32)
    packed2 = highway_pack_params(*p2)
    y2 = jax.block_until_ready(highway_forward(x2, packed2))
    np.testing.assert_allclose(np.asarray(y2),
                               np.asarray(reference_forward(x2, *p2)),
                               rtol=1e-5, atol=1e-5, err_msg="row-tiled f32 case")

    # 3) column-tiled weight path (forced via a tiny weight-VMEM budget)
    D3, B3 = 256, 40
    p3 = init_params(k5, D3)
    x3 = jax.random.normal(k6, (B3, D3), jnp.float32)
    packed3 = highway_pack_params(*p3, weight_vmem_budget=128 << 10)
    assert packed3.n_col > 1, "column-tiled path not exercised"
    y3 = jax.block_until_ready(highway_forward(x3, packed3))
    np.testing.assert_allclose(np.asarray(y3),
                               np.asarray(reference_forward(x3, *p3)),
                               rtol=1e-5, atol=1e-5, err_msg="column-tiled f32 case")

    # 4) bf16 storage of x / fused weight (MXU-native), f32 accumulation
    packed4 = highway_pack_params(*p2, compute_dtype=jnp.bfloat16)
    y4 = jax.block_until_ready(highway_forward(x2, packed4))
    np.testing.assert_allclose(np.asarray(y4),
                               np.asarray(reference_forward(x2, *p2)),
                               rtol=1e-1, atol=1e-1, err_msg="bf16 case")

    print("KERNEL_OK")
</pallas_src>

<mosaic_0001>
module attributes {stable_mosaic.version = 11 : i64} {
  func.func @_highway_kernel_full(%arg0: i32, %arg1: memref<8x128xf32, #tpu.memory_space<vmem>>, %arg2: memref<128x256xf32, #tpu.memory_space<vmem>>, %arg3: memref<1x256xf32, #tpu.memory_space<vmem>>, %arg4: memref<8x128xf32, #tpu.memory_space<vmem>>) attributes {dimension_semantics = [#tpu.dimension_semantics<parallel>], iteration_bounds = array<i64: 1>, scalar_prefetch = 0 : i64, scratch_operands = 0 : i64, tpu.core_type = #tpu.core_type<tc>, window_params = [{transform_indices = @transform_0, window_bounds = array<i64: 8, 128>}, {pipeline_mode = #tpu.pipeline_mode<synchronous>, transform_indices = @transform_1, window_bounds = array<i64: 128, 256>}, {pipeline_mode = #tpu.pipeline_mode<synchronous>, transform_indices = @transform_2, window_bounds = array<i64: 1, 256>}, {transform_indices = @transform_3, window_bounds = array<i64: 8, 128>}]} {
    %c0 = arith.constant 0 : index
    %c0_0 = arith.constant 0 : index
    %0 = vector.load %arg1[%c0, %c0_0] : memref<8x128xf32, #tpu.memory_space<vmem>>, vector<8x128xf32>
    %c0_1 = arith.constant 0 : index
    %c0_2 = arith.constant 0 : index
    %1 = vector.load %arg2[%c0_1, %c0_2] : memref<128x256xf32, #tpu.memory_space<vmem>>, vector<128x256xf32>
    %cst = arith.constant dense<0.000000e+00> : vector<8x256xf32>
    %2 = tpu.matmul %0, %1, %cst {dimension_numbers = #tpu.dot_dimension_numbers<[1], [0], [0], [1], [0, 0, 1, 1], [], []>} : vector<8x128xf32>, vector<128x256xf32>, vector<8x256xf32> -> vector<8x256xf32>
    %c0_3 = arith.constant 0 : index
    %c0_4 = arith.constant 0 : index
    %3 = vector.load %arg3[%c0_3, %c0_4] : memref<1x256xf32, #tpu.memory_space<vmem>>, vector<1x256xf32>
    %4 = vector.broadcast %3 : vector<1x256xf32> to vector<8x256xf32>
    %5 = arith.addf %2, %4 : vector<8x256xf32>
    %6 = vector.extract_strided_slice %5 {offsets = [0, 0], sizes = [8, 128], strides = [1, 1]} : vector<8x256xf32> to vector<8x128xf32>
    %cst_5 = arith.constant 0.000000e+00 : f32
    %7 = vector.broadcast %cst_5 : f32 to vector<8x128xf32>
    %8 = arith.maximumf %6, %7 : vector<8x128xf32>
    %9 = vector.extract_strided_slice %5 {offsets = [0, 128], sizes = [8, 128], strides = [1, 1]} : vector<8x256xf32> to vector<8x128xf32>
    %10 = arith.negf %9 : vector<8x128xf32>
    %11 = math.exp %10 : vector<8x128xf32>
    %cst_6 = arith.constant 1.000000e+00 : f32
    %12 = vector.broadcast %cst_6 : f32 to vector<8x128xf32>
    %13 = arith.addf %12, %11 : vector<8x128xf32>
    %14 = arith.divf %12, %13 : vector<8x128xf32>
    %15 = arith.subf %8, %0 : vector<8x128xf32>
    %16 = arith.mulf %14, %15 : vector<8x128xf32>
    %17 = arith.addf %0, %16 : vector<8x128xf32>
    %c0_7 = arith.constant 0 : index
    %c0_8 = arith.constant 0 : index
    %18 = vector.load %arg4[%c0_7, %c0_8] : memref<8x128xf32, #tpu.memory_space<vmem>>, vector<8x128xf32>
    tpu.vector_store %arg4[%c0_7, %c0_8], %17 {strides = array<i32>} : memref<8x128xf32, #tpu.memory_space<vmem>>, vector<8x128xf32>,
    return
  }
  func.func @transform_0(%arg0: i32) -> (i32, i32) {
    %c0_i32 = arith.constant 0 : i32
    %c0_i32_0 = arith.constant 0 : i32
    return %arg0, %c0_i32 : i32, i32
  }
  func.func @transform_1(%arg0: i32) -> (i32, i32) {
    %c0_i32 = arith.constant 0 : i32
    %c0_i32_0 = arith.constant 0 : i32
    %c0_i32_1 = arith.constant 0 : i32
    return %c0_i32, %c0_i32_0 : i32, i32
  }
  func.func @transform_2(%arg0: i32) -> (i32, i32) {
    %c0_i32 = arith.constant 0 : i32
    %c0_i32_0 = arith.constant 0 : i32
    %c0_i32_1 = arith.constant 0 : i32
    return %c0_i32, %c0_i32_0 : i32, i32
  }
  func.func @transform_3(%arg0: i32) -> (i32, i32) {
    %c0_i32 = arith.constant 0 : i32
    %c0_i32_0 = arith.constant 0 : i32
    return %arg0, %c0_i32 : i32, i32
  }
}

module attributes {stable_mosaic.version = 11 : i64} {
  func.func @_highway_kernel_full(%arg0: i32, %arg1: memref<8x128xf32, #tpu.memory_space<vmem>>, %arg2: memref<128x256xf32, #tpu.memory_space<vmem>>, %arg3: memref<1x256xf32, #tpu.memory_space<vmem>>, %arg4: memref<8x128xf32, #tpu.memory_space<vmem>>) attributes {dimension_semantics = [#tpu.dimension_semantics<parallel>], iteration_bounds = array<i64: 1>, scalar_prefetch = 0 : i64, scratch_operands = 0 : i64, tpu.core_type = #tpu.core_type<tc>, window_params = [{transform_indices = @transform_0, window_bounds = array<i64: 8, 128>}, {pipeline_mode = #tpu.pipeline_mode<synchronous>, transform_indices = @transform_1, window_bounds = array<i64: 128, 256>}, {pipeline_mode = #tpu.pipeline_mode<synchronous>, transform_indices = @transform_2, window_bounds = array<i64: 1, 256>}, {transform_indices = @transform_3, window_bounds = array<i64: 8, 128>}]} {
    %c0 = arith.constant 0 : index
    %c0_0 = arith.constant 0 : index
    %0 = vector.load %arg1[%c0, %c0_0] : memref<8x128xf32, #tpu.memory_space<vmem>>, vector<8x128xf32>
    %c0_1 = arith.constant 0 : index
    %c0_2 = arith.constant 0 : index
    %1 = vector.load %arg2[%c0_1, %c0_2] : memref<128x256xf32, #tpu.memory_space<vmem>>, vector<128x256xf32>
    %cst = arith.constant dense<0.000000e+00> : vector<8x256xf32>
    %2 = tpu.matmul %0, %1, %cst {dimension_numbers = #tpu.dot_dimension_numbers<[1], [0], [0], [1], [0, 0, 1, 1], [], []>} : vector<8x128xf32>, vector<128x256xf32>, vector<8x256xf32> -> vector<8x256xf32>
    %c0_3 = arith.constant 0 : index
    %c0_4 = arith.constant 0 : index
    %3 = vector.load %arg3[%c0_3, %c0_4] : memref<1x256xf32, #tpu.memory_space<vmem>>, vector<1x256xf32>
    %4 = vector.broadcast %3 : vector<1x256xf32> to vector<8x256xf32>
    %5 = arith.addf %2, %4 : vector<8x256xf32>
    %6 = vector.extract_strided_slice %5 {offsets = [0, 0], sizes = [8, 128], strides = [1, 1]} : vector<8x256xf32> to vector<8x128xf32>
    %cst_5 = arith.constant 0.000000e+00 : f32
    %7 = vector.broadcast %cst_5 : f32 to vector<8x128xf32>
    %8 = arith.maximumf %6, %7 : vector<8x128xf32>
    %9 = vector.extract_strided_slice %5 {offsets = [0, 128], sizes = [8, 128], strides = [1, 1]} : vector<8x256xf32> to vector<8x128xf32>
    %10 = arith.negf %9 : vector<8x128xf32>
    %11 = math.exp %10 : vector<8x128xf32>
    %cst_6 = arith.constant 1.000000e+00 : f32
    %12 = vector.broadcast %cst_6 : f32 to vector<8x128xf32>
    %13 = arith.addf %12, %11 : vector<8x128xf32>
    %14 = arith.divf %12, %13 : vector<8x128xf32>
    %15 = arith.subf %8, %0 : vector<8x128xf32>
    %16 = arith.mulf %14, %15 : vector<8x128xf32>
    %17 = arith.addf %0, %16 : vector<8x128xf32>
    %c0_7 = arith.constant 0 : index
    %c0_8 = arith.constant 0 : index
    %18 = vector.load %arg4[%c0_7, %c0_8] : memref<8x128xf32, #tpu.memory_space<vmem>>, vector<8x128xf32>
    tpu.vector_store %arg4[%c0_7, %c0_8], %17 {strides = array<i32>} : memref<8x128xf32, #tpu.memory_space<vmem>>, vector<8x128xf32>,
    return
  }
  func.func @transform_0(%arg0: i32) -> (i32, i32) {
    %c0_i32 = arith.constant 0 : i32
    %c0_i32_0 = arith.constant 0 : i32
    return %arg0, %c0_i32 : i32, i32
  }
  func.func @transform_1(%arg0: i32) -> (i32, i32) {
    %c0_i32 = arith.constant 0 : i32
    %c0_i32_0 = arith.constant 0 : i32
    %c0_i32_1 = arith.constant 0 : i32
    return %c0_i32, %c0_i32_0 : i32, i32
  }
  func.func @transform_2(%arg0: i32) -> (i32, i32) {
    %c0_i32 = arith.constant 0 : i32
    %c0_i32_0 = arith.constant 0 : i32
    %c0_i32_1 = arith.constant 0 : i32
    return %c0_i32, %c0_i32_0 : i32, i32
  }
  func.func @transform_3(%arg0: i32) -> (i32, i32) {
    %c0_i32 = arith.constant 0 : i32
    %c0_i32_0 = arith.constant 0 : i32
    return %arg0, %c0_i32 : i32, i32
  }
}

</mosaic_0001>

<bundles_post_ra>
// kernel: tpu_custom_call.1
= control target key start
LH: loop header
LB: loop body
LE: loop exit
PB: predicated region body
PF: predicated region fallthrough
CT: control target
= control target key end

     0   :  { %8 = vsyncpa [#allocation3], 0  ;;  %s299_s0 = inlined_call_operand.hbm [shape: f32[8,128], index: 0, kind: input, shape index: {}]   ;;  %s300_s1 = inlined_call_operand.hbm [shape: f32[128,256], index: 1, kind: input, shape index: {}]   ;;  %s301_s2 = inlined_call_operand.vmem [shape: f32[1,256], index: 2, kind: input, shape index: {}]   ;;  %s302_s3 = inlined_call_operand.hbm [shape: f32[8,128], index: 3, kind: output, shape index: {}]  }
   0x1   :  { %9 = vsyncpa [#allocation6], 0 }
   0x2   :  { %10 = vsyncpa [#allocation4], 0  ;;  %s261_s12 = smov [#allocation2]   ;;  %s262_s14 = smov [#allocation5]  }
   0x3   :  { %s17_s13 = sshll.u32 %s261_s12, 4  ;;  %s26_s15 = sshll.u32 %s262_s14, 4  ;;  %s18_s13 = int_to_ptr.vmem [resolvable:$true] %s17_s13  ;;  %s27_s15 = int_to_ptr.vmem [resolvable:$true] %s26_s15 }
   0x4   :  { %s203_s16 = scalar_lea.vmem %s18_s13, 128  ;;  %p208_p1 = scmp.lt.s32.totalorder %s18_s13, %s18_s13 }
   0x5   :  { %p204_p0 = scmp.ne.s32.totalorder %s18_s13, %s203_s16  ;;  %p209_p2 = scmp.lt.s32.totalorder %s203_s16, %s203_s16 }
   0x7   :  { %p210_p3 = por %p209_p2, %p208_p1 }
   0x9   :  { %p211_p4 = pnand %p210_p3, %p204_p0 }
   0xb   :  { %214 = shalt.err (!%p211_p4)
}
   0xc   :  { %20 = dma.hbm_to_vmem [thread:$0]  %s299_s0, 128, %s18_s13, [#allocation3]  }
   0xd   :  { %s223_s19 = scalar_lea.vmem %s27_s15, 4096  ;;  %p228_p6 = scmp.lt.s32.totalorder %s27_s15, %s27_s15 }
   0xe   :  { %p224_p5 = scmp.ne.s32.totalorder %s27_s15, %s223_s19  ;;  %p229_p7 = scmp.lt.s32.totalorder %s223_s19, %s223_s19 }
  0x10   :  { %p230_p8 = por %p229_p7, %p228_p6 }
  0x12   :  { %p231_p9 = pnand %p230_p8, %p224_p5 }
  0x14   :  { %234 = shalt.err (!%p231_p9)
}
  0x15   :  { %s263_s20 = smov 256   ;;  %s264_s21 = smov 16  }
  0x16   :  { %32 = dma.hbm_to_vmem [thread:$0]  %s300_s1, 4096, %s27_s15, [#allocation6], %s263_s20, %s263_s20, %s264_s21  }
  0x17   :  { %255 = dma.done.wait [#allocation3], 128  }
  0x18   :  { %256 = vsyncadd [#allocation3], 4294967168 }
  0x19   :  { %257 = dma.done.wait [#allocation6], 4096  }
  0x1a   :  { %258 = vsyncadd [#allocation6], 4294963200  ;;  %v265_v0 = vmov 0.0   ;;  %v73_v1 = vld [vmem:[#allocation5 + $0xf8] sm:$0xff]  ;;  %v72_v2 = vld [vmem:[#allocation5 + $0xf0] sm:$0xff]  ;;  %v76_v34 = vlaneseq  ;;  %s266_s24 = smov [#allocation7]  }
  0x1b   :  { %150 = vmatprep.mubr.f32.mxu0 %v265_v0  ;;  %v71_v3 = vld [vmem:[#allocation5 + $0xe8] sm:$0xff]  ;;  %86 = vmatprep.subr.mxu0 %v73_v1  ;;  %v70_v4 = vld [vmem:[#allocation5 + $0xe0] sm:$0xff]  ;;  %v69_v5 = vld [vmem:[#allocation5 + $0xd8] sm:$0xff]  ;;  %s174_s25 = sshll.u32 %s266_s24, 4  ;;  %s175_s25 = int_to_ptr.vmem [resolvable:$true] %s174_s25 }
  0x1c   :  { %87 = vmatpush1.msra.mxu0 %v72_v2  ;;  %v68_v6 = vld [vmem:[#allocation5 + $0xd0] sm:$0xff]  ;;  %v67_v7 = vld [vmem:[#allocation5 + $0xc8] sm:$0xff]  ;;  %v66_v8 = vld [vmem:[#allocation5 + $0xc0] sm:$0xff]  ;;  %v77_v35 = vshrl.u32 %v76_v34, 7  ;;  %p240_p11 = scmp.lt.s32.totalorder %s175_s25, %s175_s25 }
  0x1d   :  { %88 = vmatprep.subr.mxu0 %v71_v3  ;;  %v65_v9 = vld [vmem:[#allocation5 + $0xb8] sm:$0xff]  ;;  %v64_v10 = vld [vmem:[#allocation5 + $0xb0] sm:$0xff]  ;;  %v63_v11 = vld [vmem:[#allocation5 + $0xa8] sm:$0xff] }
  0x1e   :  { %89 = vmatpush1.msra.mxu0 %v70_v4  ;;  %v62_v12 = vld [vmem:[#allocation5 + $0xa0] sm:$0xff]  ;;  %v61_v13 = vld [vmem:[#allocation5 + $0x98] sm:$0xff]  ;;  %v60_v14 = vld [vmem:[#allocation5 + $0x90] sm:$0xff]  ;;  %v82_v36 = vsub.s32 1, %v77_v35  ;;  %v78_v43 = vsub.s32 0, %v77_v35 }
  0x1f   :  { %90 = vmatprep.subr.mxu0 %v69_v5  ;;  %v59_v15 = vld [vmem:[#allocation5 + $0x88] sm:$0xff]  ;;  %v58_v16 = vld [vmem:[#allocation5 + $0x80] sm:$0xff]  ;;  %v57_v17 = vld [vmem:[#allocation5 + $0x78] sm:$0xff] }
  0x20   :  { %91 = vmatpush1.msra.mxu0 %v68_v6  ;;  %v56_v18 = vld [vmem:[#allocation5 + $0x70] sm:$0xff]  ;;  %v55_v19 = vld [vmem:[#allocation5 + $0x68] sm:$0xff]  ;;  %v54_v20 = vld [vmem:[#allocation5 + $0x60] sm:$0xff] }
  0x21   :  { %92 = vmatprep.subr.mxu0 %v67_v7  ;;  %v53_v21 = vld [vmem:[#allocation5 + $0x58] sm:$0xff]  ;;  %v52_v22 = vld [vmem:[#allocation5 + $0x50] sm:$0xff]  ;;  %v51_v23 = vld [vmem:[#allocation5 + $0x48] sm:$0xff] }
  0x22   :  { %93 = vmatpush1.msra.mxu0 %v66_v8  ;;  %v50_v24 = vld [vmem:[#allocation5 + $0x40] sm:$0xff]  ;;  %v49_v25 = vld [vmem:[#allocation5 + $0x38] sm:$0xff]  ;;  %v48_v26 = vld [vmem:[#allocation5 + $0x30] sm:$0xff] }
  0x23   :  { %94 = vmatprep.subr.mxu0 %v65_v9  ;;  %v47_v27 = vld [vmem:[#allocation5 + $0x28] sm:$0xff]  ;;  %v46_v28 = vld [vmem:[#allocation5 + $0x20] sm:$0xff]  ;;  %v45_v29 = vld [vmem:[#allocation5 + $0x18] sm:$0xff] }
  0x24   :  { %95 = vmatpush1.msra.mxu0 %v64_v10  ;;  %v44_v30 = vld [vmem:[#allocation5 + $0x10] sm:$0xff]  ;;  %v43_v31 = vld [vmem:[#allocation5 + $0x8] sm:$0xff]  ;;  %v42_v32 = vld [vmem:[#allocation5] sm:$0xff] }
  0x25   :  { %96 = vmatprep.subr.mxu0 %v63_v11  ;;  %v41_v33 = vld [vmem:[#allocation2] sm:$0xff] }
  0x26   :  { %97 = vmatpush1.msra.mxu0 %v62_v12  ;;  %v74_v37 = vld [vmem:[%s301_s2] sm:$0x3]  ;;  %s235_s2 = scalar_lea.vmem %s175_s25, 128 }
  0x27   :  { %98 = vmatprep.subr.mxu0 %v61_v13  ;;  %v83_v38 = vrot.slane %v74_v37, %v82_v36  ;;  %v79_v46 = vrot.slane %v74_v37, %v78_v43  ;;  %p236_p10 = scmp.ne.s32.totalorder %s175_s25, %s235_s2  ;;  %p241_p12 = scmp.lt.s32.totalorder %s235_s2, %s235_s2 }
  0x28   :  { %99 = vmatpush1.msra.mxu0 %v60_v14 }
  0x29   :  { %100 = vmatprep.subr.mxu0 %v59_v15  ;;  %p242_p13 = por %p241_p12, %p240_p11 }
  0x2a   :  { %101 = vmatpush1.msra.mxu0 %v58_v16 }
  0x2b   :  { %102 = vmatprep.subr.mxu0 %v57_v17  ;;  %p243_p0 = pnand %p242_p13, %p236_p10 }
  0x2c   :  { %103 = vmatpush1.msra.mxu0 %v56_v18 }
  0x2d   :  { %104 = vmatprep.subr.mxu0 %v55_v19 }
  0x2e   :  { %105 = vmatpush1.msra.mxu0 %v54_v20 }
  0x2f   :  { %106 = vmatprep.subr.mxu0 %v53_v21 }
  0x30   :  { %107 = vmatpush1.msra.mxu0 %v52_v22 }
  0x31   :  { %108 = vmatprep.subr.mxu0 %v51_v23 }
  0x32   :  { %109 = vmatpush1.msra.mxu0 %v50_v24 }
  0x33   :  { %110 = vmatprep.subr.mxu0 %v49_v25 }
  0x34   :  { %111 = vmatpush1.msra.mxu0 %v48_v26 }
  0x35   :  { %112 = vmatprep.subr.mxu0 %v47_v27 }
  0x36   :  { %113 = vmatpush1.msra.mxu0 %v46_v28 }
  0x37   :  { %114 = vmatprep.subr.mxu0 %v45_v29 }
  0x38   :  { %115 = vmatpush1.msra.mxu0 %v44_v30 }
  0x39   :  { %116 = vmatprep.subr.mxu0 %v43_v31 }
  0x3a   :  { %117 = vmatpush1.msra.mxu0 %v42_v32 }
  0x3b   :  { %151 = vmatmul.mubr.f32.vlgmr.msra.gmra.mxu0 %v41_v33 }
  0xfb   :  { %v152_v39 = vpop.f32.mrf.mxu0 }
  0xfc   :  { %v153_v47 = vadd.f32 %v152_v39, %v79_v46 }
  0xfd   :  { %v154_v40 = vpop.f32.mrf.mxu0 }
  0xfe   :  { %v155_v41 = vadd.f32 %v154_v40, %v83_v38  ;;  %v157_v48 = vmax.f32 %v153_v47, 0.0 }
 0x100   :  { %v184_v42 = vmul.f32 -1.442695, %v155_v41  ;;  %v164_v49 = vsub.f32 %v157_v48, %v41_v33 }
 0x102   :  { %191 = vpow2.f32 %v184_v42 }
 0x10f   :  { %v192_v44 = vpop.eup %191 }
 0x110   :  { %v161_v45 = vadd.f32 1.0, %v192_v44 }
 0x112   :  { %193 = vrcp.f32 %v161_v45 }
 0x11f   :  { %v194_v50 = vpop.eup %193 }
 0x120   :  { %v165_v51 = vmul.f32 %v194_v50, %v164_v49 }
 0x122   :  { %v166_v52 = vadd.f32 %v165_v51, %v41_v33 }
 0x124   :  { %167 = vst [vmem:[#allocation7] sm:$0xff] %v166_v52 }
 0x125   :  { %246 = shalt.err (!%p243_p0)
}
 0x126   :  { %177 = dma.vmem_to_hbm [thread:$0]  %s175_s25, 128, %s302_s3, [#allocation4]  }
 0x127   :  { %259 = dma.done.wait [#allocation4], 128  }
 0x128   :  { %260 = vsyncadd [#allocation4], 4294967168 }
 0x129   :  { %181 = vsyncpa [#allocation3], 1 }
 0x12a   :  { %182 = vsyncpa [#allocation6], 1 }
 0x12b   :  { %183 = vsyncpa [#allocation4], 1 }

// kernel: tpu_custom_call.1
= control target key start
LH: loop header
LB: loop body
LE: loop exit
PB: predicated region body
PF: predicated region fallthrough
CT: control target
= control target key end

     0   :  { %8 = vsyncpa [#allocation3], 0  ;;  %s299_s0 = inlined_call_operand.hbm [shape: f32[8,128], index: 0, kind: input, shape index: {}]   ;;  %s300_s1 = inlined_call_operand.hbm [shape: f32[128,256], index: 1, kind: input, shape index: {}]   ;;  %s301_s2 = inlined_call_operand.vmem [shape: f32[1,256], index: 2, kind: input, shape index: {}]   ;;  %s302_s3 = inlined_call_operand.hbm [shape: f32[8,128], index: 3, kind: output, shape index: {}]  }
   0x1   :  { %9 = vsyncpa [#allocation6], 0 }
   0x2   :  { %10 = vsyncpa [#allocation4], 0  ;;  %s261_s12 = smov [#allocation2]   ;;  %s262_s14 = smov [#allocation5]  }
   0x3   :  { %s17_s13 = sshll.u32 %s261_s12, 4  ;;  %s26_s15 = sshll.u32 %s262_s14, 4  ;;  %s18_s13 = int_to_ptr.vmem [resolvable:$true] %s17_s13  ;;  %s27_s15 = int_to_ptr.vmem [resolvable:$true] %s26_s15 }
   0x4   :  { %s203_s16 = scalar_lea.vmem %s18_s13, 128  ;;  %p208_p1 = scmp.lt.s32.totalorder %s18_s13, %s18_s13 }
   0x5   :  { %p204_p0 = scmp.ne.s32.totalorder %s18_s13, %s203_s16  ;;  %p209_p2 = scmp.lt.s32.totalorder %s203_s16, %s203_s16 }
   0x7   :  { %p210_p3 = por %p209_p2, %p208_p1 }
   0x9   :  { %p211_p4 = pnand %p210_p3, %p204_p0 }
   0xb   :  { %214 = shalt.err (!%p211_p4)
}
   0xc   :  { %20 = dma.hbm_to_vmem [thread:$0]  %s299_s0, 128, %s18_s13, [#allocation3]  }
   0xd   :  { %s223_s19 = scalar_lea.vmem %s27_s15, 4096  ;;  %p228_p6 = scmp.lt.s32.totalorder %s27_s15, %s27_s15 }
   0xe   :  { %p224_p5 = scmp.ne.s32.totalorder %s27_s15, %s223_s19  ;;  %p229_p7 = scmp.lt.s32.totalorder %s223_s19, %s223_s19 }
  0x10   :  { %p230_p8 = por %p229_p7, %p228_p6 }
  0x12   :  { %p231_p9 = pnand %p230_p8, %p224_p5 }
  0x14   :  { %234 = shalt.err (!%p231_p9)
}
  0x15   :  { %s263_s20 = smov 256   ;;  %s264_s21 = smov 16  }
  0x16   :  { %32 = dma.hbm_to_vmem [thread:$0]  %s300_s1, 4096, %s27_s15, [#allocation6], %s263_s20, %s263_s20, %s264_s21  }
  0x17   :  { %255 = dma.done.wait [#allocation3], 128  }
  0x18   :  { %256 = vsyncadd [#allocation3], 4294967168 }
  0x19   :  { %257 = dma.done.wait [#allocation6], 4096  }
  0x1a   :  { %258 = vsyncadd [#allocation6], 4294963200  ;;  %v265_v0 = vmov 0.0   ;;  %v73_v1 = vld [vmem:[#allocation5 + $0xf8] sm:$0xff]  ;;  %v72_v2 = vld [vmem:[#allocation5 + $0xf0] sm:$0xff]  ;;  %v76_v34 = vlaneseq  ;;  %s266_s24 = smov [#allocation7]  }
  0x1b   :  { %150 = vmatprep.mubr.f32.mxu0 %v265_v0  ;;  %v71_v3 = vld [vmem:[#allocation5 + $0xe8] sm:$0xff]  ;;  %86 = vmatprep.subr.mxu0 %v73_v1  ;;  %v70_v4 = vld [vmem:[#allocation5 + $0xe0] sm:$0xff]  ;;  %v69_v5 = vld [vmem:[#allocation5 + $0xd8] sm:$0xff]  ;;  %s174_s25 = sshll.u32 %s266_s24, 4  ;;  %s175_s25 = int_to_ptr.vmem [resolvable:$true] %s174_s25 }
  0x1c   :  { %87 = vmatpush1.msra.mxu0 %v72_v2  ;;  %v68_v6 = vld [vmem:[#allocation5 + $0xd0] sm:$0xff]  ;;  %v67_v7 = vld [vmem:[#allocation5 + $0xc8] sm:$0xff]  ;;  %v66_v8 = vld [vmem:[#allocation5 + $0xc0] sm:$0xff]  ;;  %v77_v35 = vshrl.u32 %v76_v34, 7  ;;  %p240_p11 = scmp.lt.s32.totalorder %s175_s25, %s175_s25 }
  0x1d   :  { %88 = vmatprep.subr.mxu0 %v71_v3  ;;  %v65_v9 = vld [vmem:[#allocation5 + $0xb8] sm:$0xff]  ;;  %v64_v10 = vld [vmem:[#allocation5 + $0xb0] sm:$0xff]  ;;  %v63_v11 = vld [vmem:[#allocation5 + $0xa8] sm:$0xff] }
  0x1e   :  { %89 = vmatpush1.msra.mxu0 %v70_v4  ;;  %v62_v12 = vld [vmem:[#allocation5 + $0xa0] sm:$0xff]  ;;  %v61_v13 = vld [vmem:[#allocation5 + $0x98] sm:$0xff]  ;;  %v60_v14 = vld [vmem:[#allocation5 + $0x90] sm:$0xff]  ;;  %v82_v36 = vsub.s32 1, %v77_v35  ;;  %v78_v43 = vsub.s32 0, %v77_v35 }
  0x1f   :  { %90 = vmatprep.subr.mxu0 %v69_v5  ;;  %v59_v15 = vld [vmem:[#allocation5 + $0x88] sm:$0xff]  ;;  %v58_v16 = vld [vmem:[#allocation5 + $0x80] sm:$0xff]  ;;  %v57_v17 = vld [vmem:[#allocation5 + $0x78] sm:$0xff] }
  0x20   :  { %91 = vmatpush1.msra.mxu0 %v68_v6  ;;  %v56_v18 = vld [vmem:[#allocation5 + $0x70] sm:$0xff]  ;;  %v55_v19 = vld [vmem:[#allocation5 + $0x68] sm:$0xff]  ;;  %v54_v20 = vld [vmem:[#allocation5 + $0x60] sm:$0xff] }
  0x21   :  { %92 = vmatprep.subr.mxu0 %v67_v7  ;;  %v53_v21 = vld [vmem:[#allocation5 + $0x58] sm:$0xff]  ;;  %v52_v22 = vld [vmem:[#allocation5 + $0x50] sm:$0xff]  ;;  %v51_v23 = vld [vmem:[#allocation5 + $0x48] sm:$0xff] }
  0x22   :  { %93 = vmatpush1.msra.mxu0 %v66_v8  ;;  %v50_v24 = vld [vmem:[#allocation5 + $0x40] sm:$0xff]  ;;  %v49_v25 = vld [vmem:[#allocation5 + $0x38] sm:$0xff]  ;;  %v48_v26 = vld [vmem:[#allocation5 + $0x30] sm:$0xff] }
  0x23   :  { %94 = vmatprep.subr.mxu0 %v65_v9  ;;  %v47_v27 = vld [vmem:[#allocation5 + $0x28] sm:$0xff]  ;;  %v46_v28 = vld [vmem:[#allocation5 + $0x20] sm:$0xff]  ;;  %v45_v29 = vld [vmem:[#allocation5 + $0x18] sm:$0xff] }
  0x24   :  { %95 = vmatpush1.msra.mxu0 %v64_v10  ;;  %v44_v30 = vld [vmem:[#allocation5 + $0x10] sm:$0xff]  ;;  %v43_v31 = vld [vmem:[#allocation5 + $0x8] sm:$0xff]  ;;  %v42_v32 = vld [vmem:[#allocation5] sm:$0xff] }
  0x25   :  { %96 = vmatprep.subr.mxu0 %v63_v11  ;;  %v41_v33 = vld [vmem:[#allocation2] sm:$0xff] }
  0x26   :  { %97 = vmatpush1.msra.mxu0 %v62_v12  ;;  %v74_v37 = vld [vmem:[%s301_s2] sm:$0x3]  ;;  %s235_s2 = scalar_lea.vmem %s175_s25, 128 }
  0x27   :  { %98 = vmatprep.subr.mxu0 %v61_v13  ;;  %v83_v38 = vrot.slane %v74_v37, %v82_v36  ;;  %v79_v46 = vrot.slane %v74_v37, %v78_v43  ;;  %p236_p10 = scmp.ne.s32.totalorder %s175_s25, %s235_s2  ;;  %p241_p12 = scmp.lt.s32.totalorder %s235_s2, %s235_s2 }
  0x28   :  { %99 = vmatpush1.msra.mxu0 %v60_v14 }
  0x29   :  { %100 = vmatprep.subr.mxu0 %v59_v15  ;;  %p242_p13 = por %p241_p12, %p240_p11 }
  0x2a   :  { %101 = vmatpush1.msra.mxu0 %v58_v16 }
  0x2b   :  { %102 = vmatprep.subr.mxu0 %v57_v17  ;;  %p243_p0 = pnand %p242_p13, %p236_p10 }
  0x2c   :  { %103 = vmatpush1.msra.mxu0 %v56_v18 }
  0x2d   :  { %104 = vmatprep.subr.mxu0 %v55_v19 }
  0x2e   :  { %105 = vmatpush1.msra.mxu0 %v54_v20 }
  0x2f   :  { %106 = vmatprep.subr.mxu0 %v53_v21 }
  0x30   :  { %107 = vmatpush1.msra.mxu0 %v52_v22 }
  0x31   :  { %108 = vmatprep.subr.mxu0 %v51_v23 }
  0x32   :  { %109 = vmatpush1.msra.mxu0 %v50_v24 }
  0x33   :  { %110 = vmatprep.subr.mxu0 %v49_v25 }
  0x34   :  { %111 = vmatpush1.msra.mxu0 %v48_v26 }
  0x35   :  { %112 = vmatprep.subr.mxu0 %v47_v27 }
  0x36   :  { %113 = vmatpush1.msra.mxu0 %v46_v28 }
  0x37   :  { %114 = vmatprep.subr.mxu0 %v45_v29 }
  0x38   :  { %115 = vmatpush1.msra.mxu0 %v44_v30 }
  0x39   :  { %116 = vmatprep.subr.mxu0 %v43_v31 }
  0x3a   :  { %117 = vmatpush1.msra.mxu0 %v42_v32 }
  0x3b   :  { %151 = vmatmul.mubr.f32.vlgmr.msra.gmra.mxu0 %v41_v33 }
  0xfb   :  { %v152_v39 = vpop.f32.mrf.mxu0 }
  0xfc   :  { %v153_v47 = vadd.f32 %v152_v39, %v79_v46 }
  0xfd   :  { %v154_v40 = vpop.f32.mrf.mxu0 }
  0xfe   :  { %v155_v41 = vadd.f32 %v154_v40, %v83_v38  ;;  %v157_v48 = vmax.f32 %v153_v47, 0.0 }
 0x100   :  { %v184_v42 = vmul.f32 -1.442695, %v155_v41  ;;  %v164_v49 = vsub.f32 %v157_v48, %v41_v33 }
 0x102   :  { %191 = vpow2.f32 %v184_v42 }
 0x10f   :  { %v192_v44 = vpop.eup %191 }
 0x110   :  { %v161_v45 = vadd.f32 1.0, %v192_v44 }
 0x112   :  { %193 = vrcp.f32 %v161_v45 }
 0x11f   :  { %v194_v50 = vpop.eup %193 }
 0x120   :  { %v165_v51 = vmul.f32 %v194_v50, %v164_v49 }
 0x122   :  { %v166_v52 = vadd.f32 %v165_v51, %v41_v33 }
 0x124   :  { %167 = vst [vmem:[#allocation7] sm:$0xff] %v166_v52 }
 0x125   :  { %246 = shalt.err (!%p243_p0)
}
 0x126   :  { %177 = dma.vmem_to_hbm [thread:$0]  %s175_s25, 128, %s302_s3, [#allocation4]  }
 0x127   :  { %259 = dma.done.wait [#allocation4], 128  }
 0x128   :  { %260 = vsyncadd [#allocation4], 4294967168 }
 0x129   :  { %181 = vsyncpa [#allocation3], 1 }
 0x12a   :  { %182 = vsyncpa [#allocation6], 1 }
 0x12b   :  { %183 = vsyncpa [#allocation4], 1 }

</bundles_post_ra>
